<compile_context>
chip_gen: v7x
topology: tpu7x:2x2x1
jax: 0.10.0
libtpu: 0.0.40
codegen_flags: <defaults>
</compile_context>

<pallas_src>
import numpy as np
import jax
import jax.numpy as jnp
from jax.experimental import pallas as pl
from jax.experimental.pallas import tpu as pltpu


def _round_up(x, m):
    return ((x + m - 1) // m) * m


def _vmem_budget():
    """(working-set budget, vmem_limit_bytes) chosen per TPU generation."""
    vmem = 64 * 1024 * 1024  # safe default: assume the smaller (v7x-like) VMEM
    try:
        info = pltpu.get_tpu_info()
        vmem = int(getattr(info, "vmem_capacity_bytes", vmem) or vmem)
    except Exception:
        pass
    if vmem >= 100 * 1024 * 1024:           # v5e / v6e: 128 MiB physical VMEM
        return 48 * 1024 * 1024, 96 * 1024 * 1024
    return 24 * 1024 * 1024, 48 * 1024 * 1024   # v7x: 64 MiB per TensorCore


# ----------------------------------------------------------------------------
# Primary path: fused 2-D rfft2 operator (small images).
# ----------------------------------------------------------------------------

def _fused_rfft2_operator(H, W, kout_pad):
    """F2 (H*W, kout_pad): flattened image -> [real | imag | zero-pad] of rfft2."""
    Wf = W // 2 + 1
    ah = np.exp(-2j * np.pi * np.outer(np.arange(H), np.arange(H)) / H)    # (H, H)
    aw = np.exp(-2j * np.pi * np.outer(np.arange(W), np.arange(Wf)) / W)   # (W, Wf)
    f2c = np.kron(ah, aw)            # row n1*W+n2, col k1*Wf+k2
    f2 = np.zeros((H * W, kout_pad), np.float32)
    f2[:, : H * Wf] = f2c.real
    f2[:, H * Wf: 2 * H * Wf] = f2c.imag
    return jnp.asarray(f2)


def _fused_kernel(p_ref, t_ref, f2_ref, out_ref):
    B, _ = p_ref.shape
    Kp = f2_ref.shape[1]                      # multiple of 128 by construction

    # Cast in-VMEM (post-DMA); subtract in f32 (v5e VPU has no bf16 path).
    d = p_ref[...].astype(jnp.float32) - t_ref[...].astype(jnp.float32)

    # Single fused 2-D DFT matmul: (B, H*W) @ (H*W, Kp).
    y = jnp.dot(d, f2_ref[...], preferred_element_type=jnp.float32)
    a = jnp.abs(y)                            # (B, Kp)

    # Lane-tile-aligned VPU adds: (B, Kp) -> (B, 128).
    r = a[:, 0:128]
    for i in range(1, Kp // 128):
        r = r + a[:, i * 128:(i + 1) * 128]

    # Sublane-tile-aligned VPU adds: (B, 128) -> (8, 128).  B is a multiple of 8.
    p8 = r[0:8, :]
    for j in range(1, B // 8):
        p8 = p8 + r[j * 8:(j + 1) * 8, :]

    # Full, unmasked (1, 8, 128) block store; final reduce over grid in JAX.
    out_ref[...] = p8.reshape(1, 8, 128)


def _pick_batch_fused(nc, hw, kout_pad, itemsize, budget):
    per_img = 2 * 2 * hw * itemsize + 4 * (hw + 2 * kout_pad)  # inputs x2 bufs + f32 temps
    fixed = 2 * hw * kout_pad * 4                              # F2 operator (2 bufs, worst case)
    b = max(budget - fixed, per_img * 8) // per_img
    b = max(8, (b // 8) * 8)                 # multiple of 8 for the (8,128) partial tile
    b = min(b, 1024)                         # bound the unrolled reduce / trace size
    b = min(b, max(8, _round_up((nc + 1) // 2, 8)))   # keep G >= 2 when possible (v7x dual-TC)
    b = min(b, _round_up(nc, 8))
    return int(b)


def _abs_sum_fused(pred, target, budget, vmem_limit):
    N, C, H, W = pred.shape
    NC, HW = N * C, H * W
    Wf = W // 2 + 1
    kout_pad = _round_up(2 * H * Wf, 128)
    f2 = _fused_rfft2_operator(H, W, kout_pad)

    B = _pick_batch_fused(NC, HW, kout_pad, pred.dtype.itemsize, budget)
    NC_pad = _round_up(NC, B)
    G = NC_pad // B

    # Metadata-only reshapes of contiguous leading dims.
    p2 = pred.reshape(NC, HW)
    t2 = target.reshape(NC, HW)
    if NC_pad != NC:
        # Zero images contribute exactly 0 to the abs-sum.
        z = jnp.zeros((NC_pad - NC, HW), p2.dtype)
        p2 = jnp.concatenate([p2, z], axis=0)
        t2 = jnp.concatenate([t2, z], axis=0)

    partials = pl.pallas_call(
        _fused_kernel,
        out_shape=jax.ShapeDtypeStruct((G, 8, 128), jnp.float32),
        grid_spec=pltpu.PrefetchScalarGridSpec(
            num_scalar_prefetch=0,
            grid=(G,),
            in_specs=[
                pl.BlockSpec((B, HW), lambda i: (i, 0)),
                pl.BlockSpec((B, HW), lambda i: (i, 0)),
                # Constant DFT operator: block index never changes, so it is
                # only DMA'd once across the whole grid.
                pl.BlockSpec((HW, kout_pad), lambda i: (0, 0)),
            ],
            out_specs=pl.BlockSpec((1, 8, 128), lambda i: (i, 0, 0)),
        ),
        compiler_params=pltpu.CompilerParams(
            dimension_semantics=("parallel",),
            vmem_limit_bytes=vmem_limit),
    )(p2, t2, f2)

    return jnp.sum(partials)


# ----------------------------------------------------------------------------
# Fallback path: two-stage DFT (large images where F2 would not fit VMEM).
# ----------------------------------------------------------------------------

def _stage_dft_matrices(H, W, wf_pad):
    """fw (W, 2*wf_pad) = [cos | 0 | sin | 0];  fh (2H, H) = [cos ; sin]."""
    Wf = W // 2 + 1
    n2 = np.arange(W)[:, None]
    k2 = np.arange(Wf)[None, :]
    ang_w = -2.0 * np.pi * n2 * k2 / W
    fw = np.zeros((W, 2 * wf_pad), np.float32)
    fw[:, :Wf] = np.cos(ang_w)
    fw[:, wf_pad:wf_pad + Wf] = np.sin(ang_w)

    k1 = np.arange(H)[:, None]
    n1 = np.arange(H)[None, :]
    ang_h = -2.0 * np.pi * k1 * n1 / H
    fh = np.concatenate([np.cos(ang_h), np.sin(ang_h)], axis=0).astype(np.float32)
    return jnp.asarray(fw), jnp.asarray(fh)


def _two_stage_kernel(p_ref, t_ref, fw_ref, fh_ref, out_ref):
    B, H, W = p_ref.shape
    F = fw_ref.shape[1]            # 2 * Wf_pad (multiple of 256)
    Wf_pad = F // 2

    d = p_ref[...].astype(jnp.float32) - t_ref[...].astype(jnp.float32)

    # Stage 1: rfft along W for all B images in one MXU matmul.
    y = jnp.dot(d.reshape(B * H, W), fw_ref[...], preferred_element_type=jnp.float32)

    fh = fh_ref[...]
    s = jnp.float32(0.0)
    # Static unroll over the (small) per-step batch; each iteration is one
    # plain 2-D matmul (2H, H) @ (H, F) — no broadcast, no batched einsum.
    for b in range(B):
        yb = y[b * H:(b + 1) * H, :]                                        # (H, F)
        z = jnp.dot(fh, yb, preferred_element_type=jnp.float32)             # (2H, F)
        zr = z[:H, :Wf_pad] - z[H:, Wf_pad:]       # lane split at Wf_pad: tile-aligned
        zi = z[:H, Wf_pad:] + z[H:, :Wf_pad]
        s = s + jnp.sum(jnp.abs(zr)) + jnp.sum(jnp.abs(zi))

    # Scalar partial per step; negligible vs the O(H^2 * Wf) matmuls this path
    # is used for (large images).
    out_ref[...] = jnp.full(out_ref.shape, s, dtype=out_ref.dtype)


def _pick_batch_2stage(nc, h, w, wf_pad, itemsize, budget):
    f = 2 * wf_pad
    per_img = 2 * 2 * h * w * itemsize + 4 * (h * w + h * f)
    fixed = 4 * (w * f + 2 * h * h + 2 * h * f)
    b = max(budget - fixed, per_img) // per_img
    b = int(max(1, min(b, 8)))           # cap the static per-image unroll
    if nc >= 2:
        b = min(b, (nc + 1) // 2)        # keep G >= 2 (v7x dual TensorCore)
    return b


def _abs_sum_two_stage(pred, target, budget, vmem_limit):
    N, C, H, W = pred.shape
    NC = N * C
    Wf = W // 2 + 1
    Wf_pad = _round_up(Wf, 128)
    fw, fh = _stage_dft_matrices(H, W, Wf_pad)

    B = _pick_batch_2stage(NC, H, W, Wf_pad, pred.dtype.itemsize, budget)
    NC_pad = _round_up(NC, B)
    G = NC_pad // B

    p3 = pred.reshape(NC, H, W)
    t3 = target.reshape(NC, H, W)
    if NC_pad != NC:
        z = jnp.zeros((NC_pad - NC, H, W), p3.dtype)
        p3 = jnp.concatenate([p3, z], axis=0)
        t3 = jnp.concatenate([t3, z], axis=0)

    # TODO(synk): for extremely large images (H, W >~ 1k) even B=1 intermediates
    # may exceed the v7x VMEM budget; that regime would need K-tiling of fw/fh.
    partials = pl.pallas_call(
        _two_stage_kernel,
        out_shape=jax.ShapeDtypeStruct((G, 1, 128), jnp.float32),
        grid_spec=pltpu.PrefetchScalarGridSpec(
            num_scalar_prefetch=0,
            grid=(G,),
            in_specs=[
                pl.BlockSpec((B, H, W), lambda i: (i, 0, 0)),
                pl.BlockSpec((B, H, W), lambda i: (i, 0, 0)),
                pl.BlockSpec((W, 2 * Wf_pad), lambda i: (0, 0)),
                pl.BlockSpec((2 * H, H), lambda i: (0, 0)),
            ],
            out_specs=pl.BlockSpec((1, 1, 128), lambda i: (i, 0, 0)),
        ),
        compiler_params=pltpu.CompilerParams(
            dimension_semantics=("parallel",),
            vmem_limit_bytes=vmem_limit),
    )(p3, t3, fw, fh)

    return jnp.sum(partials[:, 0, 0])


# ----------------------------------------------------------------------------
# Public wrapper (matches FFTLoss.forward semantics).
# ----------------------------------------------------------------------------

def fft_loss(pred, target, loss_weight=1.0, reduction="mean", force_two_stage=False):
    """JAX/Pallas equivalent of FFTLoss.forward(pred, target) for NCHW inputs."""
    assert pred.shape == target.shape and pred.ndim == 4
    N, C, H, W = pred.shape
    NC = N * C
    Wf = W // 2 + 1

    budget, vmem_limit = _vmem_budget()
    kout_pad = _round_up(2 * H * Wf, 128)
    f2_bytes = H * W * kout_pad * 4
    use_fused = (not force_two_stage) and f2_bytes <= min(8 << 20, budget // 3)

    if use_fused:
        abs_sum = _abs_sum_fused(pred, target, budget, vmem_limit)
    else:
        abs_sum = _abs_sum_two_stage(pred, target, budget, vmem_limit)

    if reduction == "mean":
        # stacked [real, imag] tensor has N*C*H*Wf*2 elements (padding adds 0s only)
        loss = abs_sum / (NC * H * Wf * 2)
    elif reduction == "sum":
        loss = abs_sum
    else:
        # TODO(synk): reduction='none' (full per-element tensor) is not supported.
        raise ValueError(f"unsupported reduction: {reduction}")
    return loss_weight * loss


def _reference_fft_loss(pred, target, loss_weight=1.0):
    pf = jnp.fft.rfft2(pred)
    tf = jnp.fft.rfft2(target)
    pf = jnp.stack([pf.real, pf.imag], axis=-1)
    tf = jnp.stack([tf.real, tf.imag], axis=-1)
    return loss_weight * jnp.mean(jnp.abs(pf - tf))


if __name__ == "__main__":
    key = jax.random.PRNGKey(0)
    k1, k2 = jax.random.split(key)
    N, C, H, W = 2, 4, 16, 16
    pred = jax.random.normal(k1, (N, C, H, W), dtype=jnp.float32)
    target = jax.random.normal(k2, (N, C, H, W), dtype=jnp.float32)

    ref = jax.block_until_ready(_reference_fft_loss(pred, target))

    # Primary (fused F2 operator) path.
    loss = jax.block_until_ready(fft_loss(pred, target, 1.0, "mean"))
    assert np.allclose(np.asarray(loss), np.asarray(ref), rtol=1e-3, atol=1e-3), (
        f"fused-path mismatch: pallas={float(loss)} ref={float(ref)}")

    # Fallback (two-stage) path, forced to exercise it on the small shape too.
    loss2 = jax.block_until_ready(fft_loss(pred, target, 1.0, "mean",
                                           force_two_stage=True))
    assert np.allclose(np.asarray(loss2), np.asarray(ref), rtol=1e-3, atol=1e-3), (
        f"two-stage-path mismatch: pallas={float(loss2)} ref={float(ref)}")

    print("KERNEL_OK")
</pallas_src>

<mosaic_0001>
module attributes {stable_mosaic.version = 11 : i64} {
  func.func @_fused_kernel(%arg0: i32, %arg1: memref<8x256xf32, #tpu.memory_space<vmem>>, %arg2: memref<8x256xf32, #tpu.memory_space<vmem>>, %arg3: memref<256x384xf32, #tpu.memory_space<vmem>>, %arg4: memref<1x8x128xf32, #tpu.memory_space<vmem>>) attributes {dimension_semantics = [#tpu.dimension_semantics<parallel>], iteration_bounds = array<i64: 1>, scalar_prefetch = 0 : i64, scratch_operands = 0 : i64, tpu.core_type = #tpu.core_type<tc>, window_params = [{transform_indices = @transform_0, window_bounds = array<i64: 8, 256>}, {transform_indices = @transform_1, window_bounds = array<i64: 8, 256>}, {pipeline_mode = #tpu.pipeline_mode<synchronous>, transform_indices = @transform_2, window_bounds = array<i64: 256, 384>}, {transform_indices = @transform_3, window_bounds = array<i64: 1, 8, 128>}]} {
    %c0 = arith.constant 0 : index
    %c0_0 = arith.constant 0 : index
    %0 = vector.load %arg1[%c0, %c0_0] : memref<8x256xf32, #tpu.memory_space<vmem>>, vector<8x256xf32>
    %c0_1 = arith.constant 0 : index
    %c0_2 = arith.constant 0 : index
    %1 = vector.load %arg2[%c0_1, %c0_2] : memref<8x256xf32, #tpu.memory_space<vmem>>, vector<8x256xf32>
    %2 = arith.subf %0, %1 : vector<8x256xf32>
    %c0_3 = arith.constant 0 : index
    %c0_4 = arith.constant 0 : index
    %3 = vector.load %arg3[%c0_3, %c0_4] : memref<256x384xf32, #tpu.memory_space<vmem>>, vector<256x384xf32>
    %cst = arith.constant dense<0.000000e+00> : vector<8x384xf32>
    %4 = tpu.matmul %2, %3, %cst {dimension_numbers = #tpu.dot_dimension_numbers<[1], [0], [0], [1], [0, 0, 1, 1], [], []>} : vector<8x256xf32>, vector<256x384xf32>, vector<8x384xf32> -> vector<8x384xf32>
    %5 = math.absf %4 : vector<8x384xf32>
    %6 = vector.extract_strided_slice %5 {offsets = [0, 0], sizes = [8, 128], strides = [1, 1]} : vector<8x384xf32> to vector<8x128xf32>
    %7 = vector.extract_strided_slice %5 {offsets = [0, 128], sizes = [8, 128], strides = [1, 1]} : vector<8x384xf32> to vector<8x128xf32>
    %8 = arith.addf %6, %7 : vector<8x128xf32>
    %9 = vector.extract_strided_slice %5 {offsets = [0, 256], sizes = [8, 128], strides = [1, 1]} : vector<8x384xf32> to vector<8x128xf32>
    %10 = arith.addf %8, %9 : vector<8x128xf32>
    %11 = vector.shape_cast %10 : vector<8x128xf32> to vector<1x8x128xf32>
    %c0_5 = arith.constant 0 : index
    %c0_6 = arith.constant 0 : index
    %c0_7 = arith.constant 0 : index
    %12 = vector.load %arg4[%c0_5, %c0_6, %c0_7] : memref<1x8x128xf32, #tpu.memory_space<vmem>>, vector<1x8x128xf32>
    tpu.vector_store %arg4[%c0_5, %c0_6, %c0_7], %11 {strides = array<i32>} : memref<1x8x128xf32, #tpu.memory_space<vmem>>, vector<1x8x128xf32>,
    return
  }
  func.func @transform_0(%arg0: i32) -> (i32, i32) {
    %c0_i32 = arith.constant 0 : i32
    %c0_i32_0 = arith.constant 0 : i32
    return %arg0, %c0_i32 : i32, i32
  }
  func.func @transform_1(%arg0: i32) -> (i32, i32) {
    %c0_i32 = arith.constant 0 : i32
    %c0_i32_0 = arith.constant 0 : i32
    return %arg0, %c0_i32 : i32, i32
  }
  func.func @transform_2(%arg0: i32) -> (i32, i32) {
    %c0_i32 = arith.constant 0 : i32
    %c0_i32_0 = arith.constant 0 : i32
    %c0_i32_1 = arith.constant 0 : i32
    return %c0_i32, %c0_i32_0 : i32, i32
  }
  func.func @transform_3(%arg0: i32) -> (i32, i32, i32) {
    %c0_i32 = arith.constant 0 : i32
    %c0_i32_0 = arith.constant 0 : i32
    %c0_i32_1 = arith.constant 0 : i32
    return %arg0, %c0_i32, %c0_i32_0 : i32, i32, i32
  }
}

</mosaic_0001>

<bundles_post_ra>
// kernel: tpu_custom_call.1
= control target key start
LH: loop header
LB: loop body
LE: loop exit
PB: predicated region body
PF: predicated region fallthrough
CT: control target
= control target key end

     0   :  { %8 = vsyncpa [#allocation3], 0  ;;  %s622_s0 = inlined_call_operand.hbm [shape: f32[8,256], index: 0, kind: input, shape index: {}]   ;;  %s623_s1 = inlined_call_operand.hbm [shape: f32[8,256], index: 1, kind: input, shape index: {}]   ;;  %s624_s2 = inlined_call_operand.hbm [shape: f32[256,384], index: 2, kind: input, shape index: {}]   ;;  %s625_s3 = inlined_call_operand.hbm [shape: f32[1,8,128], index: 3, kind: output, shape index: {}]  }
   0x1   :  { %9 = vsyncpa [#allocation6], 0 }
   0x2   :  { %10 = vsyncpa [#allocation4], 0  ;;  %s548_s12 = smov [#allocation5]   ;;  %s549_s14 = smov [#allocation2]  }
   0x3   :  { %s27_s13 = sshll.u32 %s548_s12, 4  ;;  %s17_s15 = sshll.u32 %s549_s14, 4  ;;  %s28_s13 = int_to_ptr.vmem [resolvable:$true] %s27_s13  ;;  %s18_s15 = int_to_ptr.vmem [resolvable:$true] %s17_s15 }
   0x4   :  { %s454_s18 = scalar_lea.hbm %s623_s1, 256 }
   0x5   :  { %p455_p0 = scmp.ne.s32.totalorder %s623_s1, %s454_s18  ;;  %p458_p1 = scmp.lt.u32.totalorder %s454_s18, %s623_s1 }
   0x7   :  { %p460_p2 = pnand %p458_p1, %p455_p0 }
   0x9   :  { %463 = shalt.err (!%p460_p2)
}
   0xa   :  { %s464_s23 = scalar_lea.vmem %s28_s13, 256  ;;  %p469_p4 = scmp.lt.s32.totalorder %s28_s13, %s28_s13 }
   0xb   :  { %p465_p3 = scmp.ne.s32.totalorder %s28_s13, %s464_s23  ;;  %p470_p5 = scmp.lt.s32.totalorder %s464_s23, %s464_s23 }
   0xd   :  { %p471_p6 = por %p470_p5, %p469_p4 }
   0xf   :  { %p472_p7 = pnand %p471_p6, %p465_p3 }
  0x11   :  { %475 = shalt.err (!%p472_p7)
}
  0x12   :  { %30 = dma.hbm_to_vmem [thread:$0]  %s623_s1, 256, %s28_s13, [#allocation6]  }
  0x13   :  { %s476_s28 = scalar_lea.hbm %s622_s0, 256 }
  0x14   :  { %p477_p8 = scmp.ne.s32.totalorder %s622_s0, %s476_s28  ;;  %p480_p9 = scmp.lt.u32.totalorder %s476_s28, %s622_s0 }
  0x16   :  { %p482_p10 = pnand %p480_p9, %p477_p8 }
  0x18   :  { %485 = shalt.err (!%p482_p10)
}
  0x19   :  { %s486_s6 = scalar_lea.vmem %s18_s15, 256  ;;  %p491_p12 = scmp.lt.s32.totalorder %s18_s15, %s18_s15 }
  0x1a   :  { %p487_p11 = scmp.ne.s32.totalorder %s18_s15, %s486_s6  ;;  %p492_p13 = scmp.lt.s32.totalorder %s486_s6, %s486_s6 }
  0x1c   :  { %p493_p0 = por %p492_p13, %p491_p12 }
  0x1e   :  { %p494_p1 = pnand %p493_p0, %p487_p11 }
  0x20   :  { %497 = shalt.err (!%p494_p1)
}
  0x21   :  { %20 = dma.hbm_to_vmem [thread:$0]  %s622_s0, 256, %s18_s15, [#allocation3]  }
  0x22   :  { %s550_s8 = smov [#allocation7]   ;;  %s498_s12 = scalar_lea.hbm %s624_s2, 12288 }
  0x23   :  { %s36_s9 = sshll.u32 %s550_s8, 4  ;;  %p499_p2 = scmp.ne.s32.totalorder %s624_s2, %s498_s12  ;;  %s37_s9 = int_to_ptr.vmem [resolvable:$true] %s36_s9 }
  0x24   :  { %p502_p3 = scmp.lt.u32.totalorder %s498_s12, %s624_s2 }
  0x26   :  { %p504_p4 = pnand %p502_p3, %p499_p2 }
  0x28   :  { %507 = shalt.err (!%p504_p4)
}
  0x29   :  { %s508_s18 = scalar_lea.vmem %s37_s9, 12288  ;;  %p513_p6 = scmp.lt.s32.totalorder %s37_s9, %s37_s9 }
  0x2a   :  { %p509_p5 = scmp.ne.s32.totalorder %s37_s9, %s508_s18  ;;  %p514_p7 = scmp.lt.s32.totalorder %s508_s18, %s508_s18 }
  0x2c   :  { %p515_p8 = por %p514_p7, %p513_p6 }
  0x2e   :  { %p516_p9 = pnand %p515_p8, %p509_p5 }
  0x30   :  { %519 = shalt.err (!%p516_p9)
}
  0x31   :  { %s551_s0 = smov 384   ;;  %s552_s15 = smov 24  }
  0x32   :  { %42 = dma.hbm_to_vmem [thread:$0]  %s624_s2, 12288, %s37_s9, [#allocation6], %s551_s0, %s551_s0, %s552_s15  }
  0x33   :  { %542 = dma.done.wait [#allocation3], 256  }
  0x34   :  { %543 = vsyncadd [#allocation3], 4294967040 }
  0x35   :  { %544 = dma.done.wait [#allocation6], 12544  }
  0x36   :  { %545 = vsyncadd [#allocation6], 4294954752  ;;  %v59_v0 = vld [vmem:[#allocation7 + $0x8] sm:$0xff]  ;;  %v62_v1 = vld [vmem:[#allocation7 + $0x20] sm:$0xff]  ;;  %s553_s2 = smov [#allocation8]  }
  0x37   :  { %v58_v2 = vld [vmem:[#allocation7] sm:$0xff]  ;;  %v352_v3 = vpack.c.bf16 %v62_v1, %v59_v0  ;;  %v61_v4 = vld [vmem:[#allocation7 + $0x18] sm:$0xff]  ;;  %v68_v6 = vld [vmem:[#allocation7 + $0x50] sm:$0xff]  ;;  %s307_s21 = sshll.u32 %s553_s2, 4  ;;  %s308_s21 = int_to_ptr.vmem [resolvable:$true] %s307_s21 }
  0x38   :  { %v65_v5 = vld [vmem:[#allocation7 + $0x38] sm:$0xff]  ;;  %v354_v7 = vpack.c.bf16 %v61_v4, %v58_v2  ;;  %v64_v9 = vld [vmem:[#allocation7 + $0x30] sm:$0xff]  ;;  %v67_v10 = vld [vmem:[#allocation7 + $0x48] sm:$0xff]  ;;  %s520_s22 = scalar_lea.vmem %s308_s21, 128  ;;  %p525_p11 = scmp.lt.s32.totalorder %s308_s21, %s308_s21 }
  0x39   :  { %v356_v8 = vpack.c.bf16 %v68_v6, %v65_v5  ;;  %v71_v11 = vld [vmem:[#allocation7 + $0x68] sm:$0xff]  ;;  %353 = vmatprep.subr.bf16.mxu0 %v352_v3  ;;  %v74_v12 = vld [vmem:[#allocation7 + $0x80] sm:$0xff]  ;;  %v358_v13 = vpack.c.bf16 %v67_v10, %v64_v9  ;;  %v73_v16 = vld [vmem:[#allocation7 + $0x78] sm:$0xff]  ;;  %p521_p10 = scmp.ne.s32.totalorder %s308_s21, %s520_s22  ;;  %p526_p12 = scmp.lt.s32.totalorder %s520_s22, %s520_s22 }
  0x3a   :  { %355 = vmatpush1.bf16.msra.mxu0 %v354_v7  ;;  %v360_v14 = vpack.c.bf16 %v74_v12, %v71_v11  ;;  %v70_v15 = vld [vmem:[#allocation7 + $0x60] sm:$0xff]  ;;  %v77_v17 = vld [vmem:[#allocation7 + $0x98] sm:$0xff]  ;;  %v80_v18 = vld [vmem:[#allocation7 + $0xb0] sm:$0xff] }
  0x3b   :  { %357 = vmatprep.subr.bf16.mxu0 %v356_v8  ;;  %v362_v19 = vpack.c.bf16 %v73_v16, %v70_v15  ;;  %v364_v20 = vpack.c.bf16 %v80_v18, %v77_v17  ;;  %v76_v21 = vld [vmem:[#allocation7 + $0x90] sm:$0xff]  ;;  %v79_v22 = vld [vmem:[#allocation7 + $0xa8] sm:$0xff]  ;;  %v86_v24 = vld [vmem:[#allocation7 + $0xe0] sm:$0xff]  ;;  %p527_p13 = por %p526_p12, %p525_p11 }
  0x3c   :  { %v83_v23 = vld [vmem:[#allocation7 + $0xc8] sm:$0xff]  ;;  %v108_v25 = vld [vmem:[#allocation7 + $0x190] sm:$0xff]  ;;  %v366_v27 = vpack.c.bf16 %v79_v22, %v76_v21  ;;  %v82_v28 = vld [vmem:[#allocation7 + $0xc0] sm:$0xff] }
  0x3d   :  { %v111_v26 = vld [vmem:[#allocation7 + $0x1a8] sm:$0xff]  ;;  %v60_v30 = vld [vmem:[#allocation7 + $0x10] sm:$0xff]  ;;  %v368_v32 = vpack.c.bf16 %v86_v24, %v83_v23  ;;  %v85_v33 = vld [vmem:[#allocation7 + $0xd8] sm:$0xff]  ;;  %p528_p0 = pnand %p527_p13, %p521_p10 }
  0x3e   :  { %359 = vmatpush1.bf16.msra.mxu0 %v358_v13  ;;  %v416_v29 = vpack.c.bf16 %v111_v26, %v108_v25  ;;  %v63_v31 = vld [vmem:[#allocation7 + $0x28] sm:$0xff]  ;;  %v114_v35 = vld [vmem:[#allocation7 + $0x1c0] sm:$0xff]  ;;  %v117_v36 = vld [vmem:[#allocation7 + $0x1d8] sm:$0xff]  ;;  %v370_v42 = vpack.c.bf16 %v85_v33, %v82_v28 }
  0x3f   :  { %361 = vmatprep.subr.bf16.mxu0 %v360_v14  ;;  %v418_v34 = vpack.c.bf16 %v63_v31, %v60_v30  ;;  %v89_v37 = vld [vmem:[#allocation7 + $0xf8] sm:$0xff]  ;;  %v92_v38 = vld [vmem:[#allocation7 + $0x110] sm:$0xff]  ;;  %v420_v39 = vpack.c.bf16 %v117_v36, %v114_v35  ;;  %v66_v40 = vld [vmem:[#allocation7 + $0x40] sm:$0xff] }
  0x40   :  { %417 = vmatprep.subr.bf16.mxu1 %v416_v29  ;;  %v69_v41 = vld [vmem:[#allocation7 + $0x58] sm:$0xff]  ;;  %v88_v43 = vld [vmem:[#allocation7 + $0xf0] sm:$0xff]  ;;  %v123_v46 = vld [vmem:[#allocation7 + $0x208] sm:$0xff]  ;;  %v372_v47 = vpack.c.bf16 %v92_v38, %v89_v37 }
  0x41   :  { %419 = vmatpush3.bf16.msra.mxu1 %v418_v34  ;;  %v422_v44 = vpack.c.bf16 %v69_v41, %v66_v40  ;;  %v120_v45 = vld [vmem:[#allocation7 + $0x1f0] sm:$0xff]  ;;  %v91_v48 = vld [vmem:[#allocation7 + $0x108] sm:$0xff]  ;;  %v98_v53 = vld [vmem:[#allocation7 + $0x140] sm:$0xff] }
  0x42   :  { %363 = vmatpush1.bf16.msra.mxu0 %v362_v19  ;;  %421 = vmatprep.subr.bf16.mxu1 %v420_v39  ;;  %v424_v49 = vpack.c.bf16 %v123_v46, %v120_v45  ;;  %v72_v50 = vld [vmem:[#allocation7 + $0x70] sm:$0xff]  ;;  %v75_v51 = vld [vmem:[#allocation7 + $0x88] sm:$0xff]  ;;  %v126_v54 = vld [vmem:[#allocation7 + $0x220] sm:$0xff]  ;;  %v374_v57 = vpack.c.bf16 %v91_v48, %v88_v43 }
  0x43   :  { %365 = vmatprep.subr.bf16.mxu0 %v364_v20  ;;  %v95_v52 = vld [vmem:[#allocation7 + $0x128] sm:$0xff]  ;;  %v426_v55 = vpack.c.bf16 %v75_v51, %v72_v50  ;;  %v129_v56 = vld [vmem:[#allocation7 + $0x238] sm:$0xff]  ;;  %v94_v58 = vld [vmem:[#allocation7 + $0x120] sm:$0xff] }
  0x44   :  { %v428_v59 = vpack.c.bf16 %v129_v56, %v126_v54  ;;  %v78_v60 = vld [vmem:[#allocation7 + $0xa0] sm:$0xff]  ;;  %v81_v61 = vld [vmem:[#allocation7 + $0xb8] sm:$0xff]  ;;  %v376_v62 = vpack.c.bf16 %v98_v53, %v95_v52  ;;  %v132_v0 = vld [vmem:[#allocation7 + $0x250] sm:$0xff] }
  0x45   :  { %423 = vmatpush3.bf16.msra.mxu1 %v422_v44  ;;  %v97_v63 = vld [vmem:[#allocation7 + $0x138] sm:$0xff]  ;;  %v135_v1 = vld [vmem:[#allocation7 + $0x268] sm:$0xff]  ;;  %v104_v3 = vld [vmem:[#allocation7 + $0x170] sm:$0xff]  ;;  %v430_v4 = vpack.c.bf16 %v81_v61, %v78_v60 }
  0x46   :  { %367 = vmatpush1.bf16.msra.mxu0 %v366_v27  ;;  %425 = vmatprep.subr.bf16.mxu1 %v424_v49  ;;  %v101_v2 = vld [vmem:[#allocation7 + $0x158] sm:$0xff]  ;;  %v378_v5 = vpack.c.bf16 %v97_v63, %v94_v58  ;;  %v100_v6 = vld [vmem:[#allocation7 + $0x150] sm:$0xff]  ;;  %v432_v7 = vpack.c.bf16 %v135_v1, %v132_v0  ;;  %v87_v9 = vld [vmem:[#allocation7 + $0xe8] sm:$0xff] }
  0x47   :  { %369 = vmatprep.subr.bf16.mxu0 %v368_v32  ;;  %v84_v8 = vld [vmem:[#allocation7 + $0xd0] sm:$0xff]  ;;  %v380_v10 = vpack.c.bf16 %v104_v3, %v101_v2  ;;  %v103_v11 = vld [vmem:[#allocation7 + $0x168] sm:$0xff]  ;;  %v138_v12 = vld [vmem:[#allocation7 + $0x280] sm:$0xff] }
  0x48   :  { %v141_v13 = vld [vmem:[#allocation7 + $0x298] sm:$0xff]  ;;  %v107_v14 = vld [vmem:[#allocation7 + $0x188] sm:$0xff]  ;;  %v110_v15 = vld [vmem:[#allocation7 + $0x1a0] sm:$0xff]  ;;  %v434_v16 = vpack.c.bf16 %v87_v9, %v84_v8  ;;  %v382_v17 = vpack.c.bf16 %v103_v11, %v100_v6 }
  0x49   :  { %427 = vmatpush3.bf16.msra.mxu1 %v426_v55  ;;  %v106_v18 = vld [vmem:[#allocation7 + $0x180] sm:$0xff]  ;;  %v436_v19 = vpack.c.bf16 %v141_v13, %v138_v12  ;;  %v93_v21 = vld [vmem:[#allocation7 + $0x118] sm:$0xff]  ;;  %v384_v22 = vpack.c.bf16 %v110_v15, %v107_v14  ;;  %v144_v24 = vld [vmem:[#allocation7 + $0x2b0] sm:$0xff] }
  0x4a   :  { %371 = vmatpush1.bf16.msra.mxu0 %v370_v42  ;;  %429 = vmatprep.subr.bf16.mxu1 %v428_v59  ;;  %v90_v20 = vld [vmem:[#allocation7 + $0x100] sm:$0xff]  ;;  %v109_v23 = vld [vmem:[#allocation7 + $0x198] sm:$0xff]  ;;  %v147_v25 = vld [vmem:[#allocation7 + $0x2c8] sm:$0xff] }
  0x4b   :  { %373 = vmatprep.subr.bf16.mxu0 %v372_v47  ;;  %v113_v26 = vld [vmem:[#allocation7 + $0x1b8] sm:$0xff]  ;;  %v116_v27 = vld [vmem:[#allocation7 + $0x1d0] sm:$0xff]  ;;  %v438_v29 = vpack.c.bf16 %v93_v21, %v90_v20  ;;  %v386_v31 = vpack.c.bf16 %v109_v23, %v106_v18  ;;  %v440_v32 = vpack.c.bf16 %v147_v25, %v144_v24  ;;  %v99_v33 = vld [vmem:[#allocation7 + $0x148] sm:$0xff] }
  0x4c   :  { %v112_v28 = vld [vmem:[#allocation7 + $0x1b0] sm:$0xff]  ;;  %v53_v34 = vld [vmem:[#allocation2 + $0x8] sm:$0xff]  ;;  %v55_v35 = vld [vmem:[#allocation5 + $0x8] sm:$0xff]  ;;  %v388_v36 = vpack.c.bf16 %v116_v27, %v113_v26 }
  0x4d   :  { %431 = vmatpush3.bf16.msra.mxu1 %v430_v4  ;;  %v96_v30 = vld [vmem:[#allocation7 + $0x130] sm:$0xff]  ;;  %v115_v37 = vld [vmem:[#allocation7 + $0x1c8] sm:$0xff]  ;;  %v150_v38 = vld [vmem:[#allocation7 + $0x2e0] sm:$0xff]  ;;  %v57_v40 = vsub.f32 %v53_v34, %v55_v35 }
  0x4e   :  { %375 = vmatpush1.bf16.msra.mxu0 %v374_v57  ;;  %433 = vmatprep.subr.bf16.mxu1 %v432_v7  ;;  %v153_v39 = vld [vmem:[#allocation7 + $0x2f8] sm:$0xff]  ;;  %v119_v41 = vld [vmem:[#allocation7 + $0x1e8] sm:$0xff]  ;;  %v122_v42 = vld [vmem:[#allocation7 + $0x200] sm:$0xff]  ;;  %v442_v43 = vpack.c.bf16 %v99_v33, %v96_v30  ;;  %v390_v44 = vpack.c.bf16 %v115_v37, %v112_v28 }
  0x4f   :  { %377 = vmatprep.subr.bf16.mxu0 %v376_v62  ;;  %289 = vmatprep.mubr.f32.mxu1 %v57_v40  ;;  %v444_v45 = vpack.c.bf16 %v153_v39, %v150_v38  ;;  %v102_v46 = vld [vmem:[#allocation7 + $0x160] sm:$0xff]  ;;  %v105_v47 = vld [vmem:[#allocation7 + $0x178] sm:$0xff]  ;;  %v392_v48 = vpack.c.bf16 %v122_v42, %v119_v41  ;;  %v128_v52 = vld [vmem:[#allocation7 + $0x230] sm:$0xff] }
  0x50   :  { %v118_v49 = vld [vmem:[#allocation7 + $0x1e0] sm:$0xff]  ;;  %v121_v50 = vld [vmem:[#allocation7 + $0x1f8] sm:$0xff]  ;;  %218 = vmatprep.mubr.f32.mxu0 %v57_v40  ;;  %v446_v53 = vpack.c.bf16 %v105_v47, %v102_v46  ;;  %v54_v55 = vld [vmem:[#allocation5] sm:$0xff] }
  0x51   :  { %435 = vmatpush3.bf16.msra.mxu1 %v434_v16  ;;  %v125_v51 = vld [vmem:[#allocation7 + $0x218] sm:$0xff]  ;;  %v52_v54 = vld [vmem:[#allocation2] sm:$0xff]  ;;  %v394_v56 = vpack.c.bf16 %v121_v50, %v118_v49  ;;  %v124_v58 = vld [vmem:[#allocation7 + $0x210] sm:$0xff] }
  0x52   :  { %379 = vmatpush1.bf16.msra.mxu0 %v378_v5  ;;  %437 = vmatprep.subr.bf16.mxu1 %v436_v19  ;;  %v396_v57 = vpack.c.bf16 %v128_v52, %v125_v51  ;;  %v127_v59 = vld [vmem:[#allocation7 + $0x228] sm:$0xff]  ;;  %v134_v61 = vld [vmem:[#allocation7 + $0x260] sm:$0xff]  ;;  %v56_v62 = vsub.f32 %v52_v54, %v54_v55  ;;  %v133_v2 = vld [vmem:[#allocation7 + $0x258] sm:$0xff] }
  0x53   :  { %381 = vmatprep.subr.bf16.mxu0 %v380_v10  ;;  %v131_v60 = vld [vmem:[#allocation7 + $0x248] sm:$0xff]  ;;  %v398_v63 = vpack.c.bf16 %v127_v59, %v124_v58  ;;  %v130_v1 = vld [vmem:[#allocation7 + $0x240] sm:$0xff]  ;;  %v137_v3 = vld [vmem:[#allocation7 + $0x278] sm:$0xff] }
  0x54   :  { %v400_v0 = vpack.c.bf16 %v134_v61, %v131_v60  ;;  %v140_v4 = vld [vmem:[#allocation7 + $0x290] sm:$0xff]  ;;  %v402_v5 = vpack.c.bf16 %v133_v2, %v130_v1  ;;  %v139_v8 = vld [vmem:[#allocation7 + $0x288] sm:$0xff]  ;;  %v146_v10 = vld [vmem:[#allocation7 + $0x2c0] sm:$0xff] }
  0x55   :  { %439 = vmatpush3.bf16.msra.mxu1 %v438_v29  ;;  %v404_v6 = vpack.c.bf16 %v140_v4, %v137_v3  ;;  %v136_v7 = vld [vmem:[#allocation7 + $0x270] sm:$0xff]  ;;  %v143_v9 = vld [vmem:[#allocation7 + $0x2a8] sm:$0xff]  ;;  %v142_v13 = vld [vmem:[#allocation7 + $0x2a0] sm:$0xff] }
  0x56   :  { %383 = vmatpush1.bf16.msra.mxu0 %v382_v17  ;;  %441 = vmatprep.subr.bf16.mxu1 %v440_v32  ;;  %v406_v11 = vpack.c.bf16 %v139_v8, %v136_v7  ;;  %v408_v12 = vpack.c.bf16 %v146_v10, %v143_v9  ;;  %v145_v14 = vld [vmem:[#allocation7 + $0x2b8] sm:$0xff]  ;;  %v152_v16 = vld [vmem:[#allocation7 + $0x2f0] sm:$0xff]  ;;  %v151_v20 = vld [vmem:[#allocation7 + $0x2e8] sm:$0xff] }
  0x57   :  { %385 = vmatprep.subr.bf16.mxu0 %v384_v22  ;;  %v149_v15 = vld [vmem:[#allocation7 + $0x2d8] sm:$0xff]  ;;  %v410_v17 = vpack.c.bf16 %v145_v14, %v142_v13  ;;  %v148_v19 = vld [vmem:[#allocation7 + $0x2d0] sm:$0xff] }
  0x58   :  { %v412_v18 = vpack.c.bf16 %v152_v16, %v149_v15  ;;  %v414_v21 = vpack.c.bf16 %v151_v20, %v148_v19 }
  0x59   :  { %443 = vmatpush3.bf16.msra.mxu1 %v442_v43 }
  0x5a   :  { %387 = vmatpush1.bf16.msra.mxu0 %v386_v31  ;;  %445 = vmatprep.subr.bf16.mxu1 %v444_v45 }
  0x5b   :  { %389 = vmatprep.subr.bf16.mxu0 %v388_v36 }
  0x5d   :  { %447 = vmatpush3.bf16.msra.mxu1 %v446_v53 }
  0x5e   :  { %391 = vmatpush1.bf16.msra.mxu0 %v390_v44 }
  0x5f   :  { %393 = vmatprep.subr.bf16.mxu0 %v392_v48 }
  0x60   :  { %290 = vmatmul.mubr.f32.vlgmr.msra.gmra.mrb[0].mxu1 %v56_v62 }
  0x62   :  { %395 = vmatpush1.bf16.msra.mxu0 %v394_v56 }
  0x63   :  { %397 = vmatprep.subr.bf16.mxu0 %v396_v57 }
  0x66   :  { %399 = vmatpush1.bf16.msra.mxu0 %v398_v63 }
  0x67   :  { %401 = vmatprep.subr.bf16.mxu0 %v400_v0 }
  0x6a   :  { %403 = vmatpush1.bf16.msra.mxu0 %v402_v5 }
  0x6b   :  { %405 = vmatprep.subr.bf16.mxu0 %v404_v6 }
  0x6e   :  { %407 = vmatpush1.bf16.msra.mxu0 %v406_v11 }
  0x6f   :  { %409 = vmatprep.subr.bf16.mxu0 %v408_v12 }
  0x72   :  { %411 = vmatpush1.bf16.msra.mxu0 %v410_v17 }
  0x73   :  { %413 = vmatprep.subr.bf16.mxu0 %v412_v18 }
  0x76   :  { %415 = vmatpush1.bf16.msra.mxu0 %v414_v21 }
  0x79   :  { %219 = vmatmul.mubr.f32.vlgmr.msra.gmra.mrb[0].mxu0 %v56_v62 }
 0x133   :  { %v349_v22 = vpop.f32.mrb[0].mxu1 }
 0x134   :  { %v350_v23 = vpop.f32.mrb[1].mxu1 }
 0x135   :  { %v351_v24 = vadd.f32 %v350_v23, %v349_v22 }
 0x137   :  { %v297_v28 = vand.u32 2147483647, %v351_v24 }
 0x14c   :  { %v220_v25 = vpop.f32.mrb[0].mxu0 }
 0x14d   :  { %v295_v26 = vand.u32 2147483647, %v220_v25  ;;  %v222_v27 = vpop.f32.mrb[1].mxu0 }
 0x14e   :  { %v296_v29 = vand.u32 2147483647, %v222_v27 }
 0x150   :  { %v298_v30 = vadd.f32 %v296_v29, %v295_v26 }
 0x152   :  { %v299_v31 = vadd.f32 %v298_v30, %v297_v28 }
 0x154   :  { %300 = vst [vmem:[#allocation8] sm:$0xff] %v299_v31 }
 0x155   :  { %531 = shalt.err (!%p528_p0)
}
 0x156   :  { %s532_s25 = scalar_lea.hbm %s625_s3, 128 }
 0x157   :  { %p533_p1 = scmp.ne.s32.totalorder %s625_s3, %s532_s25  ;;  %p536_p2 = scmp.lt.u32.totalorder %s532_s25, %s625_s3 }
 0x159   :  { %p538_p3 = pnand %p536_p2, %p533_p1 }
 0x15b   :  { %541 = shalt.err (!%p538_p3)
}
 0x15c   :  { %310 = dma.vmem_to_hbm [thread:$0]  %s308_s21, 128, %s625_s3, [#allocation4]  }
 0x15d   :  { %546 = dma.done.wait [#allocation4], 128  }
 0x15e   :  { %547 = vsyncadd [#allocation4], 4294967168 }
 0x15f   :  { %314 = vsyncpa [#allocation3], 1 }
 0x160   :  { %315 = vsyncpa [#allocation6], 1 }
 0x161   :  { %316 = vsyncpa [#allocation4], 1 }

</bundles_post_ra>
